<compile_context>
chip_gen: v7x
topology: tpu7x:2x2x1
jax: 0.10.0
libtpu: 0.0.40
codegen_flags: <defaults>
</compile_context>

<pallas_src>
import functools

import jax
import jax.numpy as jnp
from jax import lax
from jax.experimental import pallas as pl
from jax.experimental.pallas import tpu as pltpu

_LANE = 128          # TPU vreg lane width
_NEG_BIG = -1e30     # pad-lane bias; exp(_NEG_BIG - m) underflows to exactly 0


def _lstm_tagger_kernel(x_ref, wih_ref, whh_ref, b_ref, wout_ref, bout_ref,
                        out_ref, xproj_scr, hall_scr, h_scr, c_scr, *,
                        hidden_dim):
    """Full LSTM recurrence + Linear + log_softmax for one sequence."""
    T = x_ref.shape[0]
    H = hidden_dim

    # Batched input projection (no recurrent dependency): (T,E)@(E,4H) + bias.
    xproj_scr[...] = (
        jnp.dot(x_ref[...], wih_ref[...], preferred_element_type=jnp.float32)
        + b_ref[...])

    # h0 = c0 = zeros (matches init_hidden()); scratch is uninitialized.
    h_scr[...] = jnp.zeros_like(h_scr)
    c_scr[...] = jnp.zeros_like(c_scr)

    def step(t, carry):
        h_prev = h_scr[...]                               # (1, H)
        c_prev = c_scr[...]                               # (1, H)

        # Only the recurrent matmul stays on the serial critical path.
        gates = (xproj_scr[pl.ds(t, 1), :]
                 + jnp.dot(h_prev, whh_ref[...],
                           preferred_element_type=jnp.float32))   # (1, 4H)

        # Two full-width EUP pushes instead of four 32-lane partial ones.
        sig = jax.nn.sigmoid(gates)                       # (1, 4H)
        tnh = jnp.tanh(gates)                             # (1, 4H)
        i_g = sig[:, 0 * H:1 * H]
        f_g = sig[:, 1 * H:2 * H]
        g_g = tnh[:, 2 * H:3 * H]
        o_g = sig[:, 3 * H:4 * H]

        c_new = f_g * c_prev + i_g * g_g
        h_new = o_g * jnp.tanh(c_new)

        c_scr[...] = c_new
        h_scr[...] = h_new
        hall_scr[pl.ds(t, 1), :] = h_new                  # stash for post-loop
        return carry

    lax.fori_loop(0, T, step, 0, unroll=True)

    # Post-loop: one batched Linear + log_softmax + single lane-dense store.
    tag = (jnp.dot(hall_scr[...], wout_ref[...],
                   preferred_element_type=jnp.float32)
           + bout_ref[...])                               # (T, Tg_pad)
    m = jnp.max(tag, axis=1, keepdims=True)
    lse = jnp.log(jnp.sum(jnp.exp(tag - m), axis=1, keepdims=True)) + m
    out_ref[...] = tag - lse


class LSTMTaggerPallas:
    """JAX/Pallas port of the PyTorch LSTMTagger forward pass."""

    def __init__(self, embedding_dim, hidden_dim, vocab_size, target_size, key):
        self.embedding_dim = embedding_dim
        self.hidden_dim = hidden_dim
        self.vocab_size = vocab_size
        self.target_size = target_size

        k = jax.random.split(key, 7)
        s = 1.0 / jnp.sqrt(hidden_dim)

        # TODO(synk): nn.Embedding is created in __init__ but never used in
        # forward(); materialized for shape parity only.
        self.embedding = jax.random.normal(k[0], (vocab_size, embedding_dim),
                                           jnp.float32)

        # nn.LSTM(embedding_dim, hidden_dim): weight_ih (4H, E), weight_hh (4H, H)
        self.w_ih = jax.random.uniform(k[1], (4 * hidden_dim, embedding_dim),
                                       jnp.float32, -s, s)
        self.w_hh = jax.random.uniform(k[2], (4 * hidden_dim, hidden_dim),
                                       jnp.float32, -s, s)
        self.b_ih = jax.random.uniform(k[3], (4 * hidden_dim,), jnp.float32, -s, s)
        self.b_hh = jax.random.uniform(k[4], (4 * hidden_dim,), jnp.float32, -s, s)

        # nn.Linear(hidden_dim, target_size)
        self.w_out = jax.random.uniform(k[5], (target_size, hidden_dim),
                                        jnp.float32, -s, s)
        self.b_out = jax.random.uniform(k[6], (target_size,), jnp.float32, -s, s)

    def __call__(self, inputs):
        T = inputs.shape[0]
        E, H, Tg = self.embedding_dim, self.hidden_dim, self.target_size
        Tg_pad = ((Tg + _LANE - 1) // _LANE) * _LANE      # lane-dense output

        x = inputs.reshape(T, E).astype(jnp.float32)      # .view(len,1,-1), batch folded
        w_ih_t = self.w_ih.T                              # (E, 4H)
        w_hh_t = self.w_hh.T                              # (H, 4H)
        b = (self.b_ih + self.b_hh).reshape(1, 4 * H)     # (1, 4H)

        # Pad the output projection to lane width; pad lanes get a -1e30 bias
        # so they contribute 0 to the softmax denominator and are sliced away.
        w_out_t = jnp.zeros((H, Tg_pad), jnp.float32).at[:, :Tg].set(self.w_out.T)
        b_out = jnp.full((1, Tg_pad), _NEG_BIG, jnp.float32).at[0, :Tg].set(self.b_out)

        kernel = functools.partial(_lstm_tagger_kernel, hidden_dim=H)
        vmem = pl.BlockSpec(memory_space=pltpu.MemorySpace.VMEM)

        out_pad = pl.pallas_call(
            kernel,
            out_shape=jax.ShapeDtypeStruct((T, Tg_pad), jnp.float32),
            in_specs=[vmem] * 6,
            out_specs=vmem,
            scratch_shapes=[
                pltpu.VMEM((T, 4 * H), jnp.float32),   # x @ W_ih + b, all steps
                pltpu.VMEM((T, H), jnp.float32),       # all h_t
                pltpu.VMEM((1, H), jnp.float32),       # h carry
                pltpu.VMEM((1, H), jnp.float32),       # c carry
            ],
        )(x, w_ih_t, w_hh_t, b, w_out_t, b_out)

        return out_pad[:, :Tg]


def _reference_forward(model, inputs):
    """Pure-JAX reference matching torch.nn.LSTM + Linear + log_softmax."""
    T = inputs.shape[0]
    H = model.hidden_dim
    x = inputs.reshape(T, model.embedding_dim).astype(jnp.float32)
    h = jnp.zeros((1, H), jnp.float32)
    c = jnp.zeros((1, H), jnp.float32)
    outs = []
    for t in range(T):
        gates = x[t:t + 1] @ model.w_ih.T + h @ model.w_hh.T + model.b_ih + model.b_hh
        i = jax.nn.sigmoid(gates[:, 0 * H:1 * H])
        f = jax.nn.sigmoid(gates[:, 1 * H:2 * H])
        g = jnp.tanh(gates[:, 2 * H:3 * H])
        o = jax.nn.sigmoid(gates[:, 3 * H:4 * H])
        c = f * c + i * g
        h = o * jnp.tanh(c)
        outs.append(h)
    out = jnp.concatenate(outs, axis=0)                  # (T, H)
    tag_space = out @ model.w_out.T + model.b_out        # (T, Tg)
    return jax.nn.log_softmax(tag_space, axis=1)


if __name__ == "__main__":
    EMBEDDING_DIM = 32
    HIDDEN_DIM = 32
    VOCAB_SIZE = 100
    TARGET_SIZE = 16
    SEQ_LEN = 8

    key = jax.random.PRNGKey(0)
    k_param, k_input = jax.random.split(key)

    model = LSTMTaggerPallas(EMBEDDING_DIM, HIDDEN_DIM, VOCAB_SIZE, TARGET_SIZE,
                             k_param)

    # forward() views inputs as (len, 1, -1): a (T, E) float sequence.
    inputs = jax.random.normal(k_input, (SEQ_LEN, EMBEDDING_DIM), jnp.float32)

    tags = model(inputs)
    tags = jax.block_until_ready(tags)

    ref = _reference_forward(model, inputs)
    assert tags.shape == (SEQ_LEN, TARGET_SIZE)
    assert jnp.allclose(tags, ref, atol=1e-5, rtol=1e-5), "mismatch vs reference"

    print("KERNEL_OK")
</pallas_src>

<mosaic_0001>
module attributes {stable_mosaic.version = 11 : i64} {
  func.func @_lstm_tagger_kernel(%arg0: memref<8x32xf32, #tpu.memory_space<vmem>>, %arg1: memref<32x128xf32, #tpu.memory_space<vmem>>, %arg2: memref<32x128xf32, #tpu.memory_space<vmem>>, %arg3: memref<1x128xf32, #tpu.memory_space<vmem>>, %arg4: memref<32x128xf32, #tpu.memory_space<vmem>>, %arg5: memref<1x128xf32, #tpu.memory_space<vmem>>, %arg6: memref<8x128xf32, #tpu.memory_space<vmem>>, %arg7: memref<8x128xf32, #tpu.memory_space<vmem>>, %arg8: memref<8x32xf32, #tpu.memory_space<vmem>>, %arg9: memref<1x32xf32, #tpu.memory_space<vmem>>, %arg10: memref<1x32xf32, #tpu.memory_space<vmem>>) attributes {dimension_semantics = [], scalar_prefetch = 0 : i64, scratch_operands = 4 : i64, tpu.core_type = #tpu.core_type<tc>} {
    %c0 = arith.constant 0 : index
    %c0_0 = arith.constant 0 : index
    %0 = vector.load %arg0[%c0, %c0_0] : memref<8x32xf32, #tpu.memory_space<vmem>>, vector<8x32xf32>
    %c0_1 = arith.constant 0 : index
    %c0_2 = arith.constant 0 : index
    %1 = vector.load %arg1[%c0_1, %c0_2] : memref<32x128xf32, #tpu.memory_space<vmem>>, vector<32x128xf32>
    %cst = arith.constant dense<0.000000e+00> : vector<8x128xf32>
    %2 = tpu.matmul %0, %1, %cst {dimension_numbers = #tpu.dot_dimension_numbers<[1], [0], [0], [1], [0, 0, 1, 1], [], []>} : vector<8x32xf32>, vector<32x128xf32>, vector<8x128xf32> -> vector<8x128xf32>
    %c0_3 = arith.constant 0 : index
    %c0_4 = arith.constant 0 : index
    %3 = vector.load %arg3[%c0_3, %c0_4] : memref<1x128xf32, #tpu.memory_space<vmem>>, vector<1x128xf32>
    %4 = vector.broadcast %3 : vector<1x128xf32> to vector<8x128xf32>
    %5 = arith.addf %2, %4 : vector<8x128xf32>
    %c0_5 = arith.constant 0 : index
    %c0_6 = arith.constant 0 : index
    %6 = vector.load %arg7[%c0_5, %c0_6] : memref<8x128xf32, #tpu.memory_space<vmem>>, vector<8x128xf32>
    tpu.vector_store %arg7[%c0_5, %c0_6], %5 {strides = array<i32>} : memref<8x128xf32, #tpu.memory_space<vmem>>, vector<8x128xf32>,
    %cst_7 = arith.constant 0.000000e+00 : f32
    %7 = vector.broadcast %cst_7 : f32 to vector<1x32xf32>
    %c0_8 = arith.constant 0 : index
    %c0_9 = arith.constant 0 : index
    %8 = vector.load %arg9[%c0_8, %c0_9] : memref<1x32xf32, #tpu.memory_space<vmem>>, vector<1x32xf32>
    tpu.vector_store %arg9[%c0_8, %c0_9], %7 {strides = array<i32>} : memref<1x32xf32, #tpu.memory_space<vmem>>, vector<1x32xf32>,
    %cst_10 = arith.constant 0.000000e+00 : f32
    %9 = vector.broadcast %cst_10 : f32 to vector<1x32xf32>
    %c0_11 = arith.constant 0 : index
    %c0_12 = arith.constant 0 : index
    %10 = vector.load %arg10[%c0_11, %c0_12] : memref<1x32xf32, #tpu.memory_space<vmem>>, vector<1x32xf32>
    tpu.vector_store %arg10[%c0_11, %c0_12], %9 {strides = array<i32>} : memref<1x32xf32, #tpu.memory_space<vmem>>, vector<1x32xf32>,
    %c0_i32 = arith.constant 0 : i32
    %c0_13 = arith.constant 0 : index
    %c0_14 = arith.constant 0 : index
    %11 = vector.load %arg9[%c0_13, %c0_14] : memref<1x32xf32, #tpu.memory_space<vmem>>, vector<1x32xf32>
    %c0_15 = arith.constant 0 : index
    %c0_16 = arith.constant 0 : index
    %12 = vector.load %arg10[%c0_15, %c0_16] : memref<1x32xf32, #tpu.memory_space<vmem>>, vector<1x32xf32>
    %13 = arith.index_cast %c0_i32 : i32 to index
    %c0_17 = arith.constant 0 : index
    %14 = vector.load %arg7[%13, %c0_17] : memref<8x128xf32, #tpu.memory_space<vmem>>, vector<1x128xf32>
    %c0_18 = arith.constant 0 : index
    %c0_19 = arith.constant 0 : index
    %15 = vector.load %arg2[%c0_18, %c0_19] : memref<32x128xf32, #tpu.memory_space<vmem>>, vector<32x128xf32>
    %cst_20 = arith.constant dense<0.000000e+00> : vector<1x128xf32>
    %16 = tpu.matmul %11, %15, %cst_20 {dimension_numbers = #tpu.dot_dimension_numbers<[1], [0], [0], [1], [0, 0, 1, 1], [], []>} : vector<1x32xf32>, vector<32x128xf32>, vector<1x128xf32> -> vector<1x128xf32>
    %17 = arith.addf %14, %16 : vector<1x128xf32>
    %18 = arith.negf %17 : vector<1x128xf32>
    %19 = math.exp %18 : vector<1x128xf32>
    %cst_21 = arith.constant 1.000000e+00 : f32
    %20 = vector.broadcast %cst_21 : f32 to vector<1x128xf32>
    %21 = arith.addf %20, %19 : vector<1x128xf32>
    %22 = arith.divf %20, %21 : vector<1x128xf32>
    %23 = math.tanh %17 : vector<1x128xf32>
    %24 = vector.extract_strided_slice %22 {offsets = [0, 0], sizes = [1, 32], strides = [1, 1]} : vector<1x128xf32> to vector<1x32xf32>
    %25 = vector.extract_strided_slice %22 {offsets = [0, 32], sizes = [1, 32], strides = [1, 1]} : vector<1x128xf32> to vector<1x32xf32>
    %26 = vector.extract_strided_slice %23 {offsets = [0, 64], sizes = [1, 32], strides = [1, 1]} : vector<1x128xf32> to vector<1x32xf32>
    %27 = vector.extract_strided_slice %22 {offsets = [0, 96], sizes = [1, 32], strides = [1, 1]} : vector<1x128xf32> to vector<1x32xf32>
    %28 = arith.mulf %25, %12 : vector<1x32xf32>
    %29 = arith.mulf %24, %26 : vector<1x32xf32>
    %30 = arith.addf %28, %29 : vector<1x32xf32>
    %31 = math.tanh %30 : vector<1x32xf32>
    %32 = arith.mulf %27, %31 : vector<1x32xf32>
    %c0_22 = arith.constant 0 : index
    %c0_23 = arith.constant 0 : index
    %33 = vector.load %arg10[%c0_22, %c0_23] : memref<1x32xf32, #tpu.memory_space<vmem>>, vector<1x32xf32>
    tpu.vector_store %arg10[%c0_22, %c0_23], %30 {strides = array<i32>} : memref<1x32xf32, #tpu.memory_space<vmem>>, vector<1x32xf32>,
    %c0_24 = arith.constant 0 : index
    %c0_25 = arith.constant 0 : index
    %34 = vector.load %arg9[%c0_24, %c0_25] : memref<1x32xf32, #tpu.memory_space<vmem>>, vector<1x32xf32>
    tpu.vector_store %arg9[%c0_24, %c0_25], %32 {strides = array<i32>} : memref<1x32xf32, #tpu.memory_space<vmem>>, vector<1x32xf32>,
    %35 = arith.index_cast %c0_i32 : i32 to index
    %c0_26 = arith.constant 0 : index
    %36 = vector.load %arg8[%35, %c0_26] : memref<8x32xf32, #tpu.memory_space<vmem>>, vector<1x32xf32>
    tpu.vector_store %arg8[%35, %c0_26], %32 {strides = array<i32>} : memref<8x32xf32, #tpu.memory_space<vmem>>, vector<1x32xf32>,
    %c1_i32 = arith.constant 1 : i32
    %c0_27 = arith.constant 0 : index
    %c0_28 = arith.constant 0 : index
    %37 = vector.load %arg9[%c0_27, %c0_28] : memref<1x32xf32, #tpu.memory_space<vmem>>, vector<1x32xf32>
    %c0_29 = arith.constant 0 : index
    %c0_30 = arith.constant 0 : index
    %38 = vector.load %arg10[%c0_29, %c0_30] : memref<1x32xf32, #tpu.memory_space<vmem>>, vector<1x32xf32>
    %39 = arith.index_cast %c1_i32 : i32 to index
    %c0_31 = arith.constant 0 : index
    %40 = vector.load %arg7[%39, %c0_31] : memref<8x128xf32, #tpu.memory_space<vmem>>, vector<1x128xf32>
    %c0_32 = arith.constant 0 : index
    %c0_33 = arith.constant 0 : index
    %41 = vector.load %arg2[%c0_32, %c0_33] : memref<32x128xf32, #tpu.memory_space<vmem>>, vector<32x128xf32>
    %cst_34 = arith.constant dense<0.000000e+00> : vector<1x128xf32>
    %42 = tpu.matmul %37, %41, %cst_34 {dimension_numbers = #tpu.dot_dimension_numbers<[1], [0], [0], [1], [0, 0, 1, 1], [], []>} : vector<1x32xf32>, vector<32x128xf32>, vector<1x128xf32> -> vector<1x128xf32>
    %43 = arith.addf %40, %42 : vector<1x128xf32>
    %44 = arith.negf %43 : vector<1x128xf32>
    %45 = math.exp %44 : vector<1x128xf32>
    %cst_35 = arith.constant 1.000000e+00 : f32
    %46 = vector.broadcast %cst_35 : f32 to vector<1x128xf32>
    %47 = arith.addf %46, %45 : vector<1x128xf32>
    %48 = arith.divf %46, %47 : vector<1x128xf32>
    %49 = math.tanh %43 : vector<1x128xf32>
    %50 = vector.extract_strided_slice %48 {offsets = [0, 0], sizes = [1, 32], strides = [1, 1]} : vector<1x128xf32> to vector<1x32xf32>
    %51 = vector.extract_strided_slice %48 {offsets = [0, 32], sizes = [1, 32], strides = [1, 1]} : vector<1x128xf32> to vector<1x32xf32>
    %52 = vector.extract_strided_slice %49 {offsets = [0, 64], sizes = [1, 32], strides = [1, 1]} : vector<1x128xf32> to vector<1x32xf32>
    %53 = vector.extract_strided_slice %48 {offsets = [0, 96], sizes = [1, 32], strides = [1, 1]} : vector<1x128xf32> to vector<1x32xf32>
    %54 = arith.mulf %51, %38 : vector<1x32xf32>
    %55 = arith.mulf %50, %52 : vector<1x32xf32>
    %56 = arith.addf %54, %55 : vector<1x32xf32>
    %57 = math.tanh %56 : vector<1x32xf32>
    %58 = arith.mulf %53, %57 : vector<1x32xf32>
    %c0_36 = arith.constant 0 : index
    %c0_37 = arith.constant 0 : index
    %59 = vector.load %arg10[%c0_36, %c0_37] : memref<1x32xf32, #tpu.memory_space<vmem>>, vector<1x32xf32>
    tpu.vector_store %arg10[%c0_36, %c0_37], %56 {strides = array<i32>} : memref<1x32xf32, #tpu.memory_space<vmem>>, vector<1x32xf32>,
    %c0_38 = arith.constant 0 : index
    %c0_39 = arith.constant 0 : index
    %60 = vector.load %arg9[%c0_38, %c0_39] : memref<1x32xf32, #tpu.memory_space<vmem>>, vector<1x32xf32>
    tpu.vector_store %arg9[%c0_38, %c0_39], %58 {strides = array<i32>} : memref<1x32xf32, #tpu.memory_space<vmem>>, vector<1x32xf32>,
    %61 = arith.index_cast %c1_i32 : i32 to index
    %c0_40 = arith.constant 0 : index
    %62 = vector.load %arg8[%61, %c0_40] : memref<8x32xf32, #tpu.memory_space<vmem>>, vector<1x32xf32>
    tpu.vector_store %arg8[%61, %c0_40], %58 {strides = array<i32>} : memref<8x32xf32, #tpu.memory_space<vmem>>, vector<1x32xf32>,
    %c2_i32 = arith.constant 2 : i32
    %c0_41 = arith.constant 0 : index
    %c0_42 = arith.constant 0 : index
    %63 = vector.load %arg9[%c0_41, %c0_42] : memref<1x32xf32, #tpu.memory_space<vmem>>, vector<1x32xf32>
    %c0_43 = arith.constant 0 : index
    %c0_44 = arith.constant 0 : index
    %64 = vector.load %arg10[%c0_43, %c0_44] : memref<1x32xf32, #tpu.memory_space<vmem>>, vector<1x32xf32>
    %65 = arith.index_cast %c2_i32 : i32 to index
    %c0_45 = arith.constant 0 : index
    %66 = vector.load %arg7[%65, %c0_45] : memref<8x128xf32, #tpu.memory_space<vmem>>, vector<1x128xf32>
    %c0_46 = arith.constant 0 : index
    %c0_47 = arith.constant 0 : index
    %67 = vector.load %arg2[%c0_46, %c0_47] : memref<32x128xf32, #tpu.memory_space<vmem>>, vector<32x128xf32>
    %cst_48 = arith.constant dense<0.000000e+00> : vector<1x128xf32>
    %68 = tpu.matmul %63, %67, %cst_48 {dimension_numbers = #tpu.dot_dimension_numbers<[1], [0], [0], [1], [0, 0, 1, 1], [], []>} : vector<1x32xf32>, vector<32x128xf32>, vector<1x128xf32> -> vector<1x128xf32>
    %69 = arith.addf %66, %68 : vector<1x128xf32>
    %70 = arith.negf %69 : vector<1x128xf32>
    %71 = math.exp %70 : vector<1x128xf32>
    %cst_49 = arith.constant 1.000000e+00 : f32
    %72 = vector.broadcast %cst_49 : f32 to vector<1x128xf32>
    %73 = arith.addf %72, %71 : vector<1x128xf32>
    %74 = arith.divf %72, %73 : vector<1x128xf32>
    %75 = math.tanh %69 : vector<1x128xf32>
    %76 = vector.extract_strided_slice %74 {offsets = [0, 0], sizes = [1, 32], strides = [1, 1]} : vector<1x128xf32> to vector<1x32xf32>
    %77 = vector.extract_strided_slice %74 {offsets = [0, 32], sizes = [1, 32], strides = [1, 1]} : vector<1x128xf32> to vector<1x32xf32>
    %78 = vector.extract_strided_slice %75 {offsets = [0, 64], sizes = [1, 32], strides = [1, 1]} : vector<1x128xf32> to vector<1x32xf32>
    %79 = vector.extract_strided_slice %74 {offsets = [0, 96], sizes = [1, 32], strides = [1, 1]} : vector<1x128xf32> to vector<1x32xf32>
    %80 = arith.mulf %77, %64 : vector<1x32xf32>
    %81 = arith.mulf %76, %78 : vector<1x32xf32>
    %82 = arith.addf %80, %81 : vector<1x32xf32>
    %83 = math.tanh %82 : vector<1x32xf32>
    %84 = arith.mulf %79, %83 : vector<1x32xf32>
    %c0_50 = arith.constant 0 : index
    %c0_51 = arith.constant 0 : index
    %85 = vector.load %arg10[%c0_50, %c0_51] : memref<1x32xf32, #tpu.memory_space<vmem>>, vector<1x32xf32>
    tpu.vector_store %arg10[%c0_50, %c0_51], %82 {strides = array<i32>} : memref<1x32xf32, #tpu.memory_space<vmem>>, vector<1x32xf32>,
    %c0_52 = arith.constant 0 : index
    %c0_53 = arith.constant 0 : index
    %86 = vector.load %arg9[%c0_52, %c0_53] : memref<1x32xf32, #tpu.memory_space<vmem>>, vector<1x32xf32>
    tpu.vector_store %arg9[%c0_52, %c0_53], %84 {strides = array<i32>} : memref<1x32xf32, #tpu.memory_space<vmem>>, vector<1x32xf32>,
    %87 = arith.index_cast %c2_i32 : i32 to index
    %c0_54 = arith.constant 0 : index
    %88 = vector.load %arg8[%87, %c0_54] : memref<8x32xf32, #tpu.memory_space<vmem>>, vector<1x32xf32>
    tpu.vector_store %arg8[%87, %c0_54], %84 {strides = array<i32>} : memref<8x32xf32, #tpu.memory_space<vmem>>, vector<1x32xf32>,
    %c3_i32 = arith.constant 3 : i32
    %c0_55 = arith.constant 0 : index
    %c0_56 = arith.constant 0 : index
    %89 = vector.load %arg9[%c0_55, %c0_56] : memref<1x32xf32, #tpu.memory_space<vmem>>, vector<1x32xf32>
    %c0_57 = arith.constant 0 : index
    %c0_58 = arith.constant 0 : index
    %90 = vector.load %arg10[%c0_57, %c0_58] : memref<1x32xf32, #tpu.memory_space<vmem>>, vector<1x32xf32>
    %91 = arith.index_cast %c3_i32 : i32 to index
    %c0_59 = arith.constant 0 : index
    %92 = vector.load %arg7[%91, %c0_59] : memref<8x128xf32, #tpu.memory_space<vmem>>, vector<1x128xf32>
    %c0_60 = arith.constant 0 : index
    %c0_61 = arith.constant 0 : index
    %93 = vector.load %arg2[%c0_60, %c0_61] : memref<32x128xf32, #tpu.memory_space<vmem>>, vector<32x128xf32>
    %cst_62 = arith.constant dense<0.000000e+00> : vector<1x128xf32>
    %94 = tpu.matmul %89, %93, %cst_62 {dimension_numbers = #tpu.dot_dimension_numbers<[1], [0], [0], [1], [0, 0, 1, 1], [], []>} : vector<1x32xf32>, vector<32x128xf32>, vector<1x128xf32> -> vector<1x128xf32>
    %95 = arith.addf %92, %94 : vector<1x128xf32>
    %96 = arith.negf %95 : vector<1x128xf32>
    %97 = math.exp %96 : vector<1x128xf32>
    %cst_63 = arith.constant 1.000000e+00 : f32
    %98 = vector.broadcast %cst_63 : f32 to vector<1x128xf32>
    %99 = arith.addf %98, %97 : vector<1x128xf32>
    %100 = arith.divf %98, %99 : vector<1x128xf32>
    %101 = math.tanh %95 : vector<1x128xf32>
    %102 = vector.extract_strided_slice %100 {offsets = [0, 0], sizes = [1, 32], strides = [1, 1]} : vector<1x128xf32> to vector<1x32xf32>
    %103 = vector.extract_strided_slice %100 {offsets = [0, 32], sizes = [1, 32], strides = [1, 1]} : vector<1x128xf32> to vector<1x32xf32>
    %104 = vector.extract_strided_slice %101 {offsets = [0, 64], sizes = [1, 32], strides = [1, 1]} : vector<1x128xf32> to vector<1x32xf32>
    %105 = vector.extract_strided_slice %100 {offsets = [0, 96], sizes = [1, 32], strides = [1, 1]} : vector<1x128xf32> to vector<1x32xf32>
    %106 = arith.mulf %103, %90 : vector<1x32xf32>
    %107 = arith.mulf %102, %104 : vector<1x32xf32>
    %108 = arith.addf %106, %107 : vector<1x32xf32>
    %109 = math.tanh %108 : vector<1x32xf32>
    %110 = arith.mulf %105, %109 : vector<1x32xf32>
    %c0_64 = arith.constant 0 : index
    %c0_65 = arith.constant 0 : index
    %111 = vector.load %arg10[%c0_64, %c0_65] : memref<1x32xf32, #tpu.memory_space<vmem>>, vector<1x32xf32>
    tpu.vector_store %arg10[%c0_64, %c0_65], %108 {strides = array<i32>} : memref<1x32xf32, #tpu.memory_space<vmem>>, vector<1x32xf32>,
    %c0_66 = arith.constant 0 : index
    %c0_67 = arith.constant 0 : index
    %112 = vector.load %arg9[%c0_66, %c0_67] : memref<1x32xf32, #tpu.memory_space<vmem>>, vector<1x32xf32>
    tpu.vector_store %arg9[%c0_66, %c0_67], %110 {strides = array<i32>} : memref<1x32xf32, #tpu.memory_space<vmem>>, vector<1x32xf32>,
    %113 = arith.index_cast %c3_i32 : i32 to index
    %c0_68 = arith.constant 0 : index
    %114 = vector.load %arg8[%113, %c0_68] : memref<8x32xf32, #tpu.memory_space<vmem>>, vector<1x32xf32>
    tpu.vector_store %arg8[%113, %c0_68], %110 {strides = array<i32>} : memref<8x32xf32, #tpu.memory_space<vmem>>, vector<1x32xf32>,
    %c4_i32 = arith.constant 4 : i32
    %c0_69 = arith.constant 0 : index
    %c0_70 = arith.constant 0 : index
    %115 = vector.load %arg9[%c0_69, %c0_70] : memref<1x32xf32, #tpu.memory_space<vmem>>, vector<1x32xf32>
    %c0_71 = arith.constant 0 : index
    %c0_72 = arith.constant 0 : index
    %116 = vector.load %arg10[%c0_71, %c0_72] : memref<1x32xf32, #tpu.memory_space<vmem>>, vector<1x32xf32>
    %117 = arith.index_cast %c4_i32 : i32 to index
    %c0_73 = arith.constant 0 : index
    %118 = vector.load %arg7[%117, %c0_73] : memref<8x128xf32, #tpu.memory_space<vmem>>, vector<1x128xf32>
    %c0_74 = arith.constant 0 : index
    %c0_75 = arith.constant 0 : index
    %119 = vector.load %arg2[%c0_74, %c0_75] : memref<32x128xf32, #tpu.memory_space<vmem>>, vector<32x128xf32>
    %cst_76 = arith.constant dense<0.000000e+00> : vector<1x128xf32>
    %120 = tpu.matmul %115, %119, %cst_76 {dimension_numbers = #tpu.dot_dimension_numbers<[1], [0], [0], [1], [0, 0, 1, 1], [], []>} : vector<1x32xf32>, vector<32x128xf32>, vector<1x128xf32> -> vector<1x128xf32>
    %121 = arith.addf %118, %120 : vector<1x128xf32>
    %122 = arith.negf %121 : vector<1x128xf32>
    %123 = math.exp %122 : vector<1x128xf32>
    %cst_77 = arith.constant 1.000000e+00 : f32
    %124 = vector.broadcast %cst_77 : f32 to vector<1x128xf32>
    %125 = arith.addf %124, %123 : vector<1x128xf32>
    %126 = arith.divf %124, %125 : vector<1x128xf32>
    %127 = math.tanh %121 : vector<1x128xf32>
    %128 = vector.extract_strided_slice %126 {offsets = [0, 0], sizes = [1, 32], strides = [1, 1]} : vector<1x128xf32> to vector<1x32xf32>
    %129 = vector.extract_strided_slice %126 {offsets = [0, 32], sizes = [1, 32], strides = [1, 1]} : vector<1x128xf32> to vector<1x32xf32>
    %130 = vector.extract_strided_slice %127 {offsets = [0, 64], sizes = [1, 32], strides = [1, 1]} : vector<1x128xf32> to vector<1x32xf32>
    %131 = vector.extract_strided_slice %126 {offsets = [0, 96], sizes = [1, 32], strides = [1, 1]} : vector<1x128xf32> to vector<1x32xf32>
    %132 = arith.mulf %129, %116 : vector<1x32xf32>
    %133 = arith.mulf %128, %130 : vector<1x32xf32>
    %134 = arith.addf %132, %133 : vector<1x32xf32>
    %135 = math.tanh %134 : vector<1x32xf32>
    %136 = arith.mulf %131, %135 : vector<1x32xf32>
    %c0_78 = arith.constant 0 : index
    %c0_79 = arith.constant 0 : index
    %137 = vector.load %arg10[%c0_78, %c0_79] : memref<1x32xf32, #tpu.memory_space<vmem>>, vector<1x32xf32>
    tpu.vector_store %arg10[%c0_78, %c0_79], %134 {strides = array<i32>} : memref<1x32xf32, #tpu.memory_space<vmem>>, vector<1x32xf32>,
    %c0_80 = arith.constant 0 : index
    %c0_81 = arith.constant 0 : index
    %138 = vector.load %arg9[%c0_80, %c0_81] : memref<1x32xf32, #tpu.memory_space<vmem>>, vector<1x32xf32>
    tpu.vector_store %arg9[%c0_80, %c0_81], %136 {strides = array<i32>} : memref<1x32xf32, #tpu.memory_space<vmem>>, vector<1x32xf32>,
    %139 = arith.index_cast %c4_i32 : i32 to index
    %c0_82 = arith.constant 0 : index
    %140 = vector.load %arg8[%139, %c0_82] : memref<8x32xf32, #tpu.memory_space<vmem>>, vector<1x32xf32>
    tpu.vector_store %arg8[%139, %c0_82], %136 {strides = array<i32>} : memref<8x32xf32, #tpu.memory_space<vmem>>, vector<1x32xf32>,
    %c5_i32 = arith.constant 5 : i32
    %c0_83 = arith.constant 0 : index
    %c0_84 = arith.constant 0 : index
    %141 = vector.load %arg9[%c0_83, %c0_84] : memref<1x32xf32, #tpu.memory_space<vmem>>, vector<1x32xf32>
    %c0_85 = arith.constant 0 : index
    %c0_86 = arith.constant 0 : index
    %142 = vector.load %arg10[%c0_85, %c0_86] : memref<1x32xf32, #tpu.memory_space<vmem>>, vector<1x32xf32>
    %143 = arith.index_cast %c5_i32 : i32 to index
    %c0_87 = arith.constant 0 : index
    %144 = vector.load %arg7[%143, %c0_87] : memref<8x128xf32, #tpu.memory_space<vmem>>, vector<1x128xf32>
    %c0_88 = arith.constant 0 : index
    %c0_89 = arith.constant 0 : index
    %145 = vector.load %arg2[%c0_88, %c0_89] : memref<32x128xf32, #tpu.memory_space<vmem>>, vector<32x128xf32>
    %cst_90 = arith.constant dense<0.000000e+00> : vector<1x128xf32>
    %146 = tpu.matmul %141, %145, %cst_90 {dimension_numbers = #tpu.dot_dimension_numbers<[1], [0], [0], [1], [0, 0, 1, 1], [], []>} : vector<1x32xf32>, vector<32x128xf32>, vector<1x128xf32> -> vector<1x128xf32>
    %147 = arith.addf %144, %146 : vector<1x128xf32>
    %148 = arith.negf %147 : vector<1x128xf32>
    %149 = math.exp %148 : vector<1x128xf32>
    %cst_91 = arith.constant 1.000000e+00 : f32
    %150 = vector.broadcast %cst_91 : f32 to vector<1x128xf32>
    %151 = arith.addf %150, %149 : vector<1x128xf32>
    %152 = arith.divf %150, %151 : vector<1x128xf32>
    %153 = math.tanh %147 : vector<1x128xf32>
    %154 = vector.extract_strided_slice %152 {offsets = [0, 0], sizes = [1, 32], strides = [1, 1]} : vector<1x128xf32> to vector<1x32xf32>
    %155 = vector.extract_strided_slice %152 {offsets = [0, 32], sizes = [1, 32], strides = [1, 1]} : vector<1x128xf32> to vector<1x32xf32>
    %156 = vector.extract_strided_slice %153 {offsets = [0, 64], sizes = [1, 32], strides = [1, 1]} : vector<1x128xf32> to vector<1x32xf32>
    %157 = vector.extract_strided_slice %152 {offsets = [0, 96], sizes = [1, 32], strides = [1, 1]} : vector<1x128xf32> to vector<1x32xf32>
    %158 = arith.mulf %155, %142 : vector<1x32xf32>
    %159 = arith.mulf %154, %156 : vector<1x32xf32>
    %160 = arith.addf %158, %159 : vector<1x32xf32>
    %161 = math.tanh %160 : vector<1x32xf32>
    %162 = arith.mulf %157, %161 : vector<1x32xf32>
    %c0_92 = arith.constant 0 : index
    %c0_93 = arith.constant 0 : index
    %163 = vector.load %arg10[%c0_92, %c0_93] : memref<1x32xf32, #tpu.memory_space<vmem>>, vector<1x32xf32>
    tpu.vector_store %arg10[%c0_92, %c0_93], %160 {strides = array<i32>} : memref<1x32xf32, #tpu.memory_space<vmem>>, vector<1x32xf32>,
    %c0_94 = arith.constant 0 : index
    %c0_95 = arith.constant 0 : index
    %164 = vector.load %arg9[%c0_94, %c0_95] : memref<1x32xf32, #tpu.memory_space<vmem>>, vector<1x32xf32>
    tpu.vector_store %arg9[%c0_94, %c0_95], %162 {strides = array<i32>} : memref<1x32xf32, #tpu.memory_space<vmem>>, vector<1x32xf32>,
    %165 = arith.index_cast %c5_i32 : i32 to index
    %c0_96 = arith.constant 0 : index
    %166 = vector.load %arg8[%165, %c0_96] : memref<8x32xf32, #tpu.memory_space<vmem>>, vector<1x32xf32>
    tpu.vector_store %arg8[%165, %c0_96], %162 {strides = array<i32>} : memref<8x32xf32, #tpu.memory_space<vmem>>, vector<1x32xf32>,
    %c6_i32 = arith.constant 6 : i32
    %c0_97 = arith.constant 0 : index
    %c0_98 = arith.constant 0 : index
    %167 = vector.load %arg9[%c0_97, %c0_98] : memref<1x32xf32, #tpu.memory_space<vmem>>, vector<1x32xf32>
    %c0_99 = arith.constant 0 : index
    %c0_100 = arith.constant 0 : index
    %168 = vector.load %arg10[%c0_99, %c0_100] : memref<1x32xf32, #tpu.memory_space<vmem>>, vector<1x32xf32>
    %169 = arith.index_cast %c6_i32 : i32 to index
    %c0_101 = arith.constant 0 : index
    %170 = vector.load %arg7[%169, %c0_101] : memref<8x128xf32, #tpu.memory_space<vmem>>, vector<1x128xf32>
    %c0_102 = arith.constant 0 : index
    %c0_103 = arith.constant 0 : index
    %171 = vector.load %arg2[%c0_102, %c0_103] : memref<32x128xf32, #tpu.memory_space<vmem>>, vector<32x128xf32>
    %cst_104 = arith.constant dense<0.000000e+00> : vector<1x128xf32>
    %172 = tpu.matmul %167, %171, %cst_104 {dimension_numbers = #tpu.dot_dimension_numbers<[1], [0], [0], [1], [0, 0, 1, 1], [], []>} : vector<1x32xf32>, vector<32x128xf32>, vector<1x128xf32> -> vector<1x128xf32>
    %173 = arith.addf %170, %172 : vector<1x128xf32>
    %174 = arith.negf %173 : vector<1x128xf32>
    %175 = math.exp %174 : vector<1x128xf32>
    %cst_105 = arith.constant 1.000000e+00 : f32
    %176 = vector.broadcast %cst_105 : f32 to vector<1x128xf32>
    %177 = arith.addf %176, %175 : vector<1x128xf32>
    %178 = arith.divf %176, %177 : vector<1x128xf32>
    %179 = math.tanh %173 : vector<1x128xf32>
    %180 = vector.extract_strided_slice %178 {offsets = [0, 0], sizes = [1, 32], strides = [1, 1]} : vector<1x128xf32> to vector<1x32xf32>
    %181 = vector.extract_strided_slice %178 {offsets = [0, 32], sizes = [1, 32], strides = [1, 1]} : vector<1x128xf32> to vector<1x32xf32>
    %182 = vector.extract_strided_slice %179 {offsets = [0, 64], sizes = [1, 32], strides = [1, 1]} : vector<1x128xf32> to vector<1x32xf32>
    %183 = vector.extract_strided_slice %178 {offsets = [0, 96], sizes = [1, 32], strides = [1, 1]} : vector<1x128xf32> to vector<1x32xf32>
    %184 = arith.mulf %181, %168 : vector<1x32xf32>
    %185 = arith.mulf %180, %182 : vector<1x32xf32>
    %186 = arith.addf %184, %185 : vector<1x32xf32>
    %187 = math.tanh %186 : vector<1x32xf32>
    %188 = arith.mulf %183, %187 : vector<1x32xf32>
    %c0_106 = arith.constant 0 : index
    %c0_107 = arith.constant 0 : index
    %189 = vector.load %arg10[%c0_106, %c0_107] : memref<1x32xf32, #tpu.memory_space<vmem>>, vector<1x32xf32>
    tpu.vector_store %arg10[%c0_106, %c0_107], %186 {strides = array<i32>} : memref<1x32xf32, #tpu.memory_space<vmem>>, vector<1x32xf32>,
    %c0_108 = arith.constant 0 : index
    %c0_109 = arith.constant 0 : index
    %190 = vector.load %arg9[%c0_108, %c0_109] : memref<1x32xf32, #tpu.memory_space<vmem>>, vector<1x32xf32>
    tpu.vector_store %arg9[%c0_108, %c0_109], %188 {strides = array<i32>} : memref<1x32xf32, #tpu.memory_space<vmem>>, vector<1x32xf32>,
    %191 = arith.index_cast %c6_i32 : i32 to index
    %c0_110 = arith.constant 0 : index
    %192 = vector.load %arg8[%191, %c0_110] : memref<8x32xf32, #tpu.memory_space<vmem>>, vector<1x32xf32>
    tpu.vector_store %arg8[%191, %c0_110], %188 {strides = array<i32>} : memref<8x32xf32, #tpu.memory_space<vmem>>, vector<1x32xf32>,
    %c7_i32 = arith.constant 7 : i32
    %c0_111 = arith.constant 0 : index
    %c0_112 = arith.constant 0 : index
    %193 = vector.load %arg9[%c0_111, %c0_112] : memref<1x32xf32, #tpu.memory_space<vmem>>, vector<1x32xf32>
    %c0_113 = arith.constant 0 : index
    %c0_114 = arith.constant 0 : index
    %194 = vector.load %arg10[%c0_113, %c0_114] : memref<1x32xf32, #tpu.memory_space<vmem>>, vector<1x32xf32>
    %195 = arith.index_cast %c7_i32 : i32 to index
    %c0_115 = arith.constant 0 : index
    %196 = vector.load %arg7[%195, %c0_115] : memref<8x128xf32, #tpu.memory_space<vmem>>, vector<1x128xf32>
    %c0_116 = arith.constant 0 : index
    %c0_117 = arith.constant 0 : index
    %197 = vector.load %arg2[%c0_116, %c0_117] : memref<32x128xf32, #tpu.memory_space<vmem>>, vector<32x128xf32>
    %cst_118 = arith.constant dense<0.000000e+00> : vector<1x128xf32>
    %198 = tpu.matmul %193, %197, %cst_118 {dimension_numbers = #tpu.dot_dimension_numbers<[1], [0], [0], [1], [0, 0, 1, 1], [], []>} : vector<1x32xf32>, vector<32x128xf32>, vector<1x128xf32> -> vector<1x128xf32>
    %199 = arith.addf %196, %198 : vector<1x128xf32>
    %200 = arith.negf %199 : vector<1x128xf32>
    %201 = math.exp %200 : vector<1x128xf32>
    %cst_119 = arith.constant 1.000000e+00 : f32
    %202 = vector.broadcast %cst_119 : f32 to vector<1x128xf32>
    %203 = arith.addf %202, %201 : vector<1x128xf32>
    %204 = arith.divf %202, %203 : vector<1x128xf32>
    %205 = math.tanh %199 : vector<1x128xf32>
    %206 = vector.extract_strided_slice %204 {offsets = [0, 0], sizes = [1, 32], strides = [1, 1]} : vector<1x128xf32> to vector<1x32xf32>
    %207 = vector.extract_strided_slice %204 {offsets = [0, 32], sizes = [1, 32], strides = [1, 1]} : vector<1x128xf32> to vector<1x32xf32>
    %208 = vector.extract_strided_slice %205 {offsets = [0, 64], sizes = [1, 32], strides = [1, 1]} : vector<1x128xf32> to vector<1x32xf32>
    %209 = vector.extract_strided_slice %204 {offsets = [0, 96], sizes = [1, 32], strides = [1, 1]} : vector<1x128xf32> to vector<1x32xf32>
    %210 = arith.mulf %207, %194 : vector<1x32xf32>
    %211 = arith.mulf %206, %208 : vector<1x32xf32>
    %212 = arith.addf %210, %211 : vector<1x32xf32>
    %213 = math.tanh %212 : vector<1x32xf32>
    %214 = arith.mulf %209, %213 : vector<1x32xf32>
    %c0_120 = arith.constant 0 : index
    %c0_121 = arith.constant 0 : index
    %215 = vector.load %arg10[%c0_120, %c0_121] : memref<1x32xf32, #tpu.memory_space<vmem>>, vector<1x32xf32>
    tpu.vector_store %arg10[%c0_120, %c0_121], %212 {strides = array<i32>} : memref<1x32xf32, #tpu.memory_space<vmem>>, vector<1x32xf32>,
    %c0_122 = arith.constant 0 : index
    %c0_123 = arith.constant 0 : index
    %216 = vector.load %arg9[%c0_122, %c0_123] : memref<1x32xf32, #tpu.memory_space<vmem>>, vector<1x32xf32>
    tpu.vector_store %arg9[%c0_122, %c0_123], %214 {strides = array<i32>} : memref<1x32xf32, #tpu.memory_space<vmem>>, vector<1x32xf32>,
    %217 = arith.index_cast %c7_i32 : i32 to index
    %c0_124 = arith.constant 0 : index
    %218 = vector.load %arg8[%217, %c0_124] : memref<8x32xf32, #tpu.memory_space<vmem>>, vector<1x32xf32>
    tpu.vector_store %arg8[%217, %c0_124], %214 {strides = array<i32>} : memref<8x32xf32, #tpu.memory_space<vmem>>, vector<1x32xf32>,
    %c8_i32 = arith.constant 8 : i32
    %c0_125 = arith.constant 0 : index
    %c0_126 = arith.constant 0 : index
    %219 = vector.load %arg8[%c0_125, %c0_126] : memref<8x32xf32, #tpu.memory_space<vmem>>, vector<8x32xf32>
    %c0_127 = arith.constant 0 : index
    %c0_128 = arith.constant 0 : index
    %220 = vector.load %arg4[%c0_127, %c0_128] : memref<32x128xf32, #tpu.memory_space<vmem>>, vector<32x128xf32>
    %cst_129 = arith.constant dense<0.000000e+00> : vector<8x128xf32>
    %221 = tpu.matmul %219, %220, %cst_129 {dimension_numbers = #tpu.dot_dimension_numbers<[1], [0], [0], [1], [0, 0, 1, 1], [], []>} : vector<8x32xf32>, vector<32x128xf32>, vector<8x128xf32> -> vector<8x128xf32>
    %c0_130 = arith.constant 0 : index
    %c0_131 = arith.constant 0 : index
    %222 = vector.load %arg5[%c0_130, %c0_131] : memref<1x128xf32, #tpu.memory_space<vmem>>, vector<1x128xf32>
    %223 = vector.broadcast %222 : vector<1x128xf32> to vector<8x128xf32>
    %224 = arith.addf %221, %223 : vector<8x128xf32>
    %cst_132 = arith.constant dense<0xFF800000> : vector<8xf32>
    %225 = vector.multi_reduction <maximumf>, %224, %cst_132 [1] : vector<8x128xf32> to vector<8xf32>
    %226 = vector.shape_cast %225 : vector<8xf32> to vector<8x1xf32>
    %227 = vector.broadcast %226 : vector<8x1xf32> to vector<8x128xf32>
    %228 = arith.subf %224, %227 : vector<8x128xf32>
    %229 = math.exp %228 : vector<8x128xf32>
    %cst_133 = arith.constant dense<0.000000e+00> : vector<8xf32>
    %230 = vector.multi_reduction <add>, %229, %cst_133 [1] : vector<8x128xf32> to vector<8xf32>
    %231 = vector.shape_cast %230 : vector<8xf32> to vector<8x1xf32>
    %232 = math.log %231 : vector<8x1xf32>
    %233 = arith.addf %232, %226 : vector<8x1xf32>
    %234 = vector.broadcast %233 : vector<8x1xf32> to vector<8x128xf32>
    %235 = arith.subf %224, %234 : vector<8x128xf32>
    %c0_134 = arith.constant 0 : index
    %c0_135 = arith.constant 0 : index
    %236 = vector.load %arg6[%c0_134, %c0_135] : memref<8x128xf32, #tpu.memory_space<vmem>>, vector<8x128xf32>
    tpu.vector_store %arg6[%c0_134, %c0_135], %235 {strides = array<i32>} : memref<8x128xf32, #tpu.memory_space<vmem>>, vector<8x128xf32>,
    return
  }
}

</mosaic_0001>

<bundles_post_ra>
// kernel: tpu_custom_call.1
= control target key start
LH: loop header
LB: loop body
LE: loop exit
PB: predicated region body
PF: predicated region fallthrough
CT: control target
= control target key end

     0   :  { %11 = vsyncpa [#allocation7], 0  ;;  %s1989_s0 = inlined_call_operand.hbm [shape: f32[8,32], index: 0, kind: input, shape index: {}]   ;;  %s1990_s1 = inlined_call_operand.hbm [shape: f32[32,128], index: 1, kind: input, shape index: {}]   ;;  %s1991_s2 = inlined_call_operand.hbm [shape: f32[32,128], index: 2, kind: input, shape index: {}]   ;;  %s1992_s3 = inlined_call_operand.vmem [shape: f32[1,128], index: 3, kind: input, shape index: {}]   ;;  %s1993_s4 = inlined_call_operand.hbm [shape: f32[32,128], index: 4, kind: input, shape index: {}]   ;;  %s1994_s5 = inlined_call_operand.vmem [shape: f32[1,128], index: 5, kind: input, shape index: {}]   ;;  %s1995_s6 = inlined_call_operand.hbm [shape: f32[8,128], index: 6, kind: output, shape index: {}]  }
   0x1   :  { %12 = vsyncpa [#allocation10], 0 }
   0x2   :  { %13 = vsyncpa [#allocation13], 0 }
   0x3   :  { %14 = vsyncpa [#allocation8], 0  ;;  %s1720_s21 = smov [#allocation9]   ;;  %s1602_s25 = scalar_lea.hbm %s1990_s1, 512 }
   0x4   :  { %s30_s22 = sshll.u32 %s1720_s21, 4  ;;  %p1603_p0 = scmp.ne.s32.totalorder %s1990_s1, %s1602_s25  ;;  %s31_s22 = int_to_ptr.vmem [resolvable:$true] %s30_s22 }
   0x5   :  { %p1606_p1 = scmp.lt.u32.totalorder %s1602_s25, %s1990_s1 }
   0x7   :  { %p1608_p2 = pnand %p1606_p1, %p1603_p0 }
   0x9   :  { %1611 = shalt.err (!%p1608_p2)
}
   0xa   :  { %s1612_s30 = scalar_lea.vmem %s31_s22, 512  ;;  %p1617_p4 = scmp.lt.s32.totalorder %s31_s22, %s31_s22 }
   0xb   :  { %p1613_p3 = scmp.ne.s32.totalorder %s31_s22, %s1612_s30  ;;  %p1618_p5 = scmp.lt.s32.totalorder %s1612_s30, %s1612_s30 }
   0xd   :  { %p1619_p6 = por %p1618_p5, %p1617_p4 }
   0xf   :  { %p1620_p7 = pnand %p1619_p6, %p1613_p3 }
  0x11   :  { %1623 = shalt.err (!%p1620_p7)
}
  0x12   :  { %s1721_s7 = smov 128   ;;  %s1722_s8 = smov 8  }
  0x13   :  { %36 = dma.hbm_to_vmem [thread:$0]  %s1990_s1, 512, %s31_s22, [#allocation10], %s1721_s7, %s1721_s7, %s1722_s8  }
  0x14   :  { %s1723_s11 = smov [#allocation6]   ;;  %s1724_s13 = smov [#allocation11]  }
  0x15   :  { %s21_s12 = sshll.u32 %s1723_s11, 4  ;;  %s42_s14 = sshll.u32 %s1724_s13, 4  ;;  %s22_s12 = int_to_ptr.vmem [resolvable:$true] %s21_s12  ;;  %s43_s14 = int_to_ptr.vmem [resolvable:$true] %s42_s14 }
  0x16   :  { %s1624_s17 = scalar_lea.hbm %s1989_s0, 128 }
  0x17   :  { %p1625_p8 = scmp.ne.s32.totalorder %s1989_s0, %s1624_s17  ;;  %p1628_p9 = scmp.lt.u32.totalorder %s1624_s17, %s1989_s0 }
  0x19   :  { %p1630_p10 = pnand %p1628_p9, %p1625_p8 }
  0x1b   :  { %1633 = shalt.err (!%p1630_p10)
}
  0x1c   :  { %s1634_s1 = scalar_lea.vmem %s22_s12, 128  ;;  %p1639_p12 = scmp.lt.s32.totalorder %s22_s12, %s22_s12 }
  0x1d   :  { %p1635_p11 = scmp.ne.s32.totalorder %s22_s12, %s1634_s1  ;;  %p1640_p13 = scmp.lt.s32.totalorder %s1634_s1, %s1634_s1 }
  0x1f   :  { %p1641_p0 = por %p1640_p13, %p1639_p12 }
  0x21   :  { %p1642_p1 = pnand %p1641_p0, %p1635_p11 }
  0x23   :  { %1645 = shalt.err (!%p1642_p1)
}
  0x24   :  { %24 = dma.hbm_to_vmem [thread:$0]  %s1989_s0, 128, %s22_s12, [#allocation7]  }
  0x25   :  { %s1646_s26 = scalar_lea.hbm %s1991_s2, 512 }
  0x26   :  { %p1647_p2 = scmp.ne.s32.totalorder %s1991_s2, %s1646_s26  ;;  %p1650_p3 = scmp.lt.u32.totalorder %s1646_s26, %s1991_s2 }
  0x28   :  { %p1652_p4 = pnand %p1650_p3, %p1647_p2 }
  0x2a   :  { %1655 = shalt.err (!%p1652_p4)
}
  0x2b   :  { %s1656_s9 = scalar_lea.vmem %s43_s14, 512  ;;  %p1661_p6 = scmp.lt.s32.totalorder %s43_s14, %s43_s14 }
  0x2c   :  { %p1657_p5 = scmp.ne.s32.totalorder %s43_s14, %s1656_s9  ;;  %p1662_p7 = scmp.lt.s32.totalorder %s1656_s9, %s1656_s9 }
  0x2e   :  { %p1663_p8 = por %p1662_p7, %p1661_p6 }
  0x30   :  { %p1664_p9 = pnand %p1663_p8, %p1657_p5 }
  0x32   :  { %1667 = shalt.err (!%p1664_p9)
}
  0x33   :  { %48 = dma.hbm_to_vmem [thread:$0]  %s1991_s2, 512, %s43_s14, [#allocation10], %s1721_s7, %s1721_s7, %s1722_s8  }
  0x34   :  { %s1725_s11 = smov [#allocation12]   ;;  %s1668_s16 = scalar_lea.hbm %s1993_s4, 512 }
  0x35   :  { %s56_s12 = sshll.u32 %s1725_s11, 4  ;;  %p1669_p10 = scmp.ne.s32.totalorder %s1993_s4, %s1668_s16  ;;  %s57_s12 = int_to_ptr.vmem [resolvable:$true] %s56_s12 }
  0x36   :  { %p1672_p11 = scmp.lt.u32.totalorder %s1668_s16, %s1993_s4 }
  0x38   :  { %p1674_p12 = pnand %p1672_p11, %p1669_p10 }
  0x3a   :  { %1677 = shalt.err (!%p1674_p12)
}
  0x3b   :  { %s1678_s21 = scalar_lea.vmem %s57_s12, 512  ;;  %p1683_p0 = scmp.lt.s32.totalorder %s57_s12, %s57_s12 }
  0x3c   :  { %p1679_p13 = scmp.ne.s32.totalorder %s57_s12, %s1678_s21  ;;  %p1684_p1 = scmp.lt.s32.totalorder %s1678_s21, %s1678_s21 }
  0x3e   :  { %p1685_p2 = por %p1684_p1, %p1683_p0 }
  0x40   :  { %p1686_p3 = pnand %p1685_p2, %p1679_p13 }
  0x42   :  { %1689 = shalt.err (!%p1686_p3)
}
  0x43   :  { %62 = dma.hbm_to_vmem [thread:$0]  %s1993_s4, 512, %s57_s12, [#allocation13], %s1721_s7, %s1721_s7, %s1722_s8  }
  0x44   :  { %1712 = dma.done.wait [#allocation7], 128  }
  0x45   :  { %1713 = vsyncadd [#allocation7], 4294967168 }
  0x46   :  { %1714 = dma.done.wait [#allocation10], 1024  }
  0x47   :  { %1715 = vsyncadd [#allocation10], 4294966272 }
  0x48   :  { %1716 = dma.done.wait [#allocation13], 512  }
  0x49   :  { %1717 = vsyncadd [#allocation13], 4294966784  ;;  %v1726_v0 = vmov 0.0|0.0   ;;  %vm1727_vm0 = vmmov 0   ;;  %v1728_v1 = vmov 0.0   ;;  %vm164_vm1 = vcmask 253952  }
  0x4a   :  { %1461 = vmatprep.subr.bf16.mxu0 %v1726_v0  ;;  %1359 = vmatprep.mubr.msk.f32.mxu0 %vm1727_vm0, %v1728_v1  ;;  %165 = vst.msk [vmem:[#allocation4] sm:$0x1] %vm164_vm1, %v1728_v1  ;;  %166 = vst.msk [vmem:[#allocation5] sm:$0x1] %vm164_vm1, %v1728_v1  ;;  %v78_v2 = vld [vmem:[#allocation9] sm:$0xff]  ;;  %v79_v3 = vld [vmem:[#allocation9 + $0x8] sm:$0xff] }
  0x4b   :  { %1467 = vmatprep.subr.bf16.mxu1 %v1726_v0  ;;  %1370 = vmatprep.mubr.msk.f32.mxu1 %vm1727_vm0, %v1728_v1  ;;  %v80_v4 = vld [vmem:[#allocation9 + $0x10] sm:$0xff]  ;;  %v1462_v5 = vpack.c.bf16 %v79_v3, %v78_v2  ;;  %v81_v6 = vld [vmem:[#allocation9 + $0x18] sm:$0xff]  ;;  %v170_v7 = vld [vmem:[#allocation11] sm:$0xff]  ;;  %vm89_vm2 = vcmask 261120   ;;  %s1729_s8 = smov 64   ;;  %s1730_s1 = smov 32  }
  0x4c   :  { %v171_v8 = vld [vmem:[#allocation11 + $0x8] sm:$0xff]  ;;  %v172_v9 = vld [vmem:[#allocation11 + $0x10] sm:$0xff]  ;;  %v173_v10 = vld [vmem:[#allocation11 + $0x18] sm:$0xff]  ;;  %v1465_v11 = vpack.c.bf16 %v81_v6, %v80_v4 }
  0x4d   :  { %1463 = vmatpush3.bf16.msra.mxu0 %v1462_v5  ;;  %v1835_v12 = vpack.c.bf16 %v171_v8, %v170_v7  ;;  %v1839_v13 = vpack.c.bf16 %v173_v10, %v172_v9  ;;  %v77_v14 = vld [vmem:[#allocation6] sm:$0xff]  ;;  %v1273_v16 = vld [vmem:[%s1992_s3] ss:$0 sm:$0xff]  ;;  %s1731_s3 = smov 96  }
  0x4e   :  { %1464 = vmatprep.subr.bf16.mxu0 %v1726_v0 }
  0x4f   :  { %1469 = vmatpush3.bf16.msra.mxu1 %v1835_v12 }
  0x50   :  { %1470 = vmatprep.subr.bf16.mxu1 %v1726_v0 }
  0x51   :  { %1466 = vmatpush3.bf16.msra.mxu0 %v1465_v11  ;;  %v167_v15 = vld [vmem:[#allocation4] sm:$0x1]  ;;  %v1277_v25 = vld [vmem:[#allocation5] ss:$0 sm:$0xff] }
  0x52   :  { %1473 = vmatprep.subr.bf16.mxu0 %v1726_v0 }
  0x53   :  { %1472 = vmatpush3.bf16.msra.mxu1 %v1839_v13 }
  0x54   :  { %1360 = vmatmul.mubr.msk.f32.vlgmr.msra.gmra.mrb[0].mxu0 %vm89_vm2, %v77_v14  ;;  %1479 = vmatprep.subr.bf16.mxu1 %v1726_v0 }
  0x55   :  { %1475 = vmatpush3.bf16.msra.mxu0 %v1835_v12  ;;  %1381 = vmatprep.mubr.msk.f32.mxu0 %vm1727_vm0, %v1728_v1 }
  0x56   :  { %1371 = vmatmul.mubr.msk.f32.vlgmr.msra.gmra.mrb[0].mxu1 %vm89_vm2, %v167_v15  ;;  %1476 = vmatprep.subr.bf16.mxu0 %v1726_v0 }
  0x57   :  { %1481 = vmatpush3.bf16.msra.mxu1 %v1835_v12  ;;  %1392 = vmatprep.mubr.msk.f32.mxu1 %vm1727_vm0, %v1728_v1 }
  0x58   :  { %1482 = vmatprep.subr.bf16.mxu1 %v1726_v0 }
  0x59   :  { %1478 = vmatpush3.bf16.msra.mxu0 %v1839_v13 }
  0x5a   :  { %1485 = vmatprep.subr.bf16.mxu0 %v1726_v0 }
  0x5b   :  { %1484 = vmatpush3.bf16.msra.mxu1 %v1839_v13 }
  0x5c   :  { %1491 = vmatprep.subr.bf16.mxu1 %v1726_v0 }
 0x127   :  { %v159_v17 = vpop.f32.mrb[0].mxu0 }
 0x128   :  { %v160_v18 = vadd.f32 %v1273_v16, %v159_v17  ;;  %v1361_v19 = vpop.f32.mrb[1].mxu0 }
 0x129   :  { %v243_v20 = vpop.f32.mrb[0].mxu1 }
 0x12a   :  { %163 = vst [vmem:[#allocation2] sm:$0xff] %v160_v18  ;;  %v1372_v21 = vpop.f32.mrb[1].mxu1 }
 0x131   :  { %v169_v22 = vld [vmem:[#allocation2] sm:$0x1]  ;;  %v293_v43 = vld [vmem:[#allocation2 + $0x1] sm:$0x1]  ;;  %v417_v3 = vld [vmem:[#allocation2 + $0x2] sm:$0x1] }
 0x132   :  { %v247_v23 = vadd.f32 %v243_v20, %v169_v22 }
 0x134   :  { %1534 = vtanh.f32 %v247_v23  ;;  %v1276_v26 = vmul.f32 -1.442695, %v247_v23 }
 0x136   :  { %1536 = vpow2.f32 %v1276_v26 }
 0x13e   :  { %v1535_v24 = vpop.eup %1534 }
 0x13f   :  { %265 = vrot.lane.b32.xlu0 %v1535_v24, %s1729_s8 }
 0x140   :  { %v1537_v27 = vpop.eup %1536 }
 0x141   :  { %v251_v28 = vadd.f32 1.0, %v1537_v27  ;;  %v541_v27 = vld [vmem:[#allocation2 + $0x3] sm:$0x1] }
 0x143   :  { %260 = vrot.lane.b32.xlu0 %v1277_v25, %s1730_s1  ;;  %1538 = vrcp.f32 %v251_v28 }
 0x14d   :  { %v1539_v29 = vpop.eup %1538 }
 0x1b1   :  { %v266_v30 = vpop.permute.xlu0 %265 }
 0x1b2   :  { %v268_v31 = vmul.f32 %v1539_v29, %v266_v30 }
 0x1b4   :  { %270 = vrot.lane.b32.xlu1 %v268_v31, %s1730_s1 }
 0x1b5   :  { %v261_v32 = vpop.permute.xlu0 %260 }
 0x1b6   :  { %v263_v33 = vmul.f32 %v1539_v29, %v261_v32 }
 0x226   :  { %v271_v34 = vpop.permute.xlu1 %270 }
 0x227   :  { %v273_v35 = vadd.f32 %v271_v34, %v263_v33 }
 0x229   :  { %1540 = vtanh.f32 %v273_v35 }
 0x233   :  { %v1541_v36 = vpop.eup %1540 }
 0x234   :  { %276 = vrot.lane.b32.xlu1 %v1541_v36, %s1729_s8 }
 0x238   :  { %281 = vrot.lane.b32.xlu1 %v273_v35, %s1731_s3 }
 0x2a6   :  { %v277_v37 = vpop.permute.xlu1 %276 }
 0x2a7   :  { %v279_v38 = vmul.f32 %v1539_v29, %v277_v37 }
 0x2a9   :  { %286 = vrot.lane.b32.xlu0 %v279_v38, %s1730_s1 }
 0x2aa   :  { %v282_v39 = vpop.permute.xlu1 %281 }
 0x2ab   :  { %284 = vst.msk [vmem:[#allocation5] sm:$0x1] %vm164_vm1, %v282_v39 }
 0x2b2   :  { %v1280_v40 = vld [vmem:[#allocation5] ss:$0 sm:$0xff] }
 0x2b3   :  { %384 = vrot.lane.b32.xlu1 %v1280_v40, %s1730_s1 }
 0x31b   :  { %v287_v41 = vpop.permute.xlu0 %286 }
 0x31c   :  { %289 = vst.msk [vmem:[#allocation4] sm:$0x1] %vm164_vm1, %v287_v41  ;;  %290 = vst.msk [vmem:[#allocation3] sm:$0x1] %vm164_vm1, %v287_v41 }
 0x323   :  { %v291_v42 = vld [vmem:[#allocation4] sm:$0x1] }
 0x324   :  { %1382 = vmatmul.mubr.msk.f32.vlgmr.msra.gmra.mrb[2].mxu0 %vm89_vm2, %v291_v42 }
 0x325   :  { %1487 = vmatpush3.bf16.msra.mxu0 %v1835_v12  ;;  %1403 = vmatprep.mubr.msk.f32.mxu0 %vm1727_vm0, %v1728_v1  ;;  %v385_v54 = vpop.permute.xlu1 %384 }
 0x326   :  { %1488 = vmatprep.subr.bf16.mxu0 %v1726_v0 }
 0x329   :  { %1490 = vmatpush3.bf16.msra.mxu0 %v1839_v13 }
 0x32a   :  { %1497 = vmatprep.subr.bf16.mxu0 %v1726_v0 }
 0x3f7   :  { %v367_v44 = vpop.f32.mrb[2].mxu0 }
 0x3f8   :  { %v371_v45 = vadd.f32 %v367_v44, %v293_v43  ;;  %v1383_v46 = vpop.f32.mrb[3].mxu0 }
 0x3fa   :  { %1542 = vtanh.f32 %v371_v45  ;;  %v1279_v48 = vmul.f32 -1.442695, %v371_v45 }
 0x3fc   :  { %1544 = vpow2.f32 %v1279_v48 }
 0x404   :  { %v1543_v47 = vpop.eup %1542 }
 0x405   :  { %389 = vrot.lane.b32.xlu0 %v1543_v47, %s1729_s8 }
 0x406   :  { %v1545_v49 = vpop.eup %1544 }
 0x407   :  { %v375_v50 = vadd.f32 1.0, %v1545_v49  ;;  %v665_v49 = vld [vmem:[#allocation2 + $0x4] sm:$0x1] }
 0x409   :  { %1546 = vrcp.f32 %v375_v50 }
 0x413   :  { %v1547_v51 = vpop.eup %1546 }
 0x414   :  { %v387_v55 = vmul.f32 %v1547_v51, %v385_v54 }
 0x477   :  { %v390_v52 = vpop.permute.xlu0 %389 }
 0x478   :  { %v392_v53 = vmul.f32 %v1547_v51, %v390_v52 }
 0x47a   :  { %394 = vrot.lane.b32.xlu0 %v392_v53, %s1730_s1 }
 0x4ec   :  { %v395_v56 = vpop.permute.xlu0 %394 }
 0x4ed   :  { %v397_v57 = vadd.f32 %v395_v56, %v387_v55 }
 0x4ef   :  { %1548 = vtanh.f32 %v397_v57 }
 0x4f9   :  { %v1549_v58 = vpop.eup %1548 }
 0x4fa   :  { %400 = vrot.lane.b32.xlu1 %v1549_v58, %s1729_s8 }
 0x4fe   :  { %405 = vrot.lane.b32.xlu1 %v397_v57, %s1731_s3 }
 0x56c   :  { %v401_v59 = vpop.permute.xlu1 %400 }
 0x56d   :  { %v403_v60 = vmul.f32 %v1547_v51, %v401_v59 }
 0x56f   :  { %410 = vrot.lane.b32.xlu0 %v403_v60, %s1730_s1 }
 0x570   :  { %v406_v61 = vpop.permute.xlu1 %405 }
 0x571   :  { %408 = vst.msk [vmem:[#allocation5] sm:$0x1] %vm164_vm1, %v406_v61 }
 0x578   :  { %v1283_v62 = vld [vmem:[#allocation5] ss:$0 sm:$0xff] }
 0x579   :  { %508 = vrot.lane.b32.xlu1 %v1283_v62, %s1730_s1 }
 0x5e1   :  { %v411_v63 = vpop.permute.xlu0 %410 }
 0x5e2   :  { %413 = vst.msk [vmem:[#allocation4] sm:$0x1] %vm164_vm1, %v411_v63  ;;  %414 = vst.msk [vmem:[#allocation3 + $0x1] sm:$0x1] %vm164_vm1, %v411_v63 }
 0x5e9   :  { %v415_v2 = vld [vmem:[#allocation4] sm:$0x1] }
 0x5ea   :  { %1393 = vmatmul.mubr.msk.f32.vlgmr.msra.gmra.mrb[2].mxu1 %vm89_vm2, %v415_v2 }
 0x5eb   :  { %1493 = vmatpush3.bf16.msra.mxu1 %v1835_v12  ;;  %1414 = vmatprep.mubr.msk.f32.mxu1 %vm1727_vm0, %v1728_v1  ;;  %v509_v16 = vpop.permute.xlu1 %508 }
 0x5ec   :  { %1494 = vmatprep.subr.bf16.mxu1 %v1726_v0 }
 0x5ef   :  { %1496 = vmatpush3.bf16.msra.mxu1 %v1839_v13 }
 0x5f0   :  { %1503 = vmatprep.subr.bf16.mxu1 %v1726_v0 }
 0x6bd   :  { %v491_v4 = vpop.f32.mrb[2].mxu1 }
 0x6be   :  { %v495_v5 = vadd.f32 %v491_v4, %v417_v3  ;;  %v1394_v6 = vpop.f32.mrb[3].mxu1 }
 0x6c0   :  { %1550 = vtanh.f32 %v495_v5  ;;  %v1282_v8 = vmul.f32 -1.442695, %v495_v5 }
 0x6c2   :  { %1552 = vpow2.f32 %v1282_v8 }
 0x6ca   :  { %v1551_v7 = vpop.eup %1550 }
 0x6cb   :  { %513 = vrot.lane.b32.xlu0 %v1551_v7, %s1729_s8 }
 0x6cc   :  { %v1553_v9 = vpop.eup %1552 }
 0x6cd   :  { %v499_v10 = vadd.f32 1.0, %v1553_v9  ;;  %v789_v9 = vld [vmem:[#allocation2 + $0x5] sm:$0x1] }
 0x6cf   :  { %1554 = vrcp.f32 %v499_v10 }
 0x6d9   :  { %v1555_v11 = vpop.eup %1554 }
 0x6da   :  { %v511_v17 = vmul.f32 %v1555_v11, %v509_v16 }
 0x73d   :  { %v514_v14 = vpop.permute.xlu0 %513 }
 0x73e   :  { %v516_v15 = vmul.f32 %v1555_v11, %v514_v14 }
 0x740   :  { %518 = vrot.lane.b32.xlu0 %v516_v15, %s1730_s1 }
 0x7b2   :  { %v519_v18 = vpop.permute.xlu0 %518 }
 0x7b3   :  { %v521_v19 = vadd.f32 %v519_v18, %v511_v17 }
 0x7b5   :  { %1556 = vtanh.f32 %v521_v19 }
 0x7bf   :  { %v1557_v20 = vpop.eup %1556 }
 0x7c0   :  { %524 = vrot.lane.b32.xlu1 %v1557_v20, %s1729_s8 }
 0x7c4   :  { %529 = vrot.lane.b32.xlu1 %v521_v19, %s1731_s3 }
 0x832   :  { %v525_v21 = vpop.permute.xlu1 %524 }
 0x833   :  { %v527_v22 = vmul.f32 %v1555_v11, %v525_v21 }
 0x835   :  { %534 = vrot.lane.b32.xlu0 %v527_v22, %s1730_s1 }
 0x836   :  { %v530_v23 = vpop.permute.xlu1 %529 }
 0x837   :  { %532 = vst.msk [vmem:[#allocation5] sm:$0x1] %vm164_vm1, %v530_v23 }
 0x83e   :  { %v1286_v24 = vld [vmem:[#allocation5] ss:$0 sm:$0xff] }
 0x83f   :  { %632 = vrot.lane.b32.xlu1 %v1286_v24, %s1730_s1 }
 0x8a7   :  { %v535_v25 = vpop.permute.xlu0 %534 }
 0x8a8   :  { %537 = vst.msk [vmem:[#allocation4] sm:$0x1] %vm164_vm1, %v535_v25  ;;  %538 = vst.msk [vmem:[#allocation3 + $0x2] sm:$0x1] %vm164_vm1, %v535_v25 }
 0x8af   :  { %v539_v26 = vld [vmem:[#allocation4] sm:$0x1] }
 0x8b0   :  { %1404 = vmatmul.mubr.msk.f32.vlgmr.msra.gmra.mrb[4].mxu0 %vm89_vm2, %v539_v26 }
 0x8b1   :  { %1499 = vmatpush3.bf16.msra.mxu0 %v1835_v12  ;;  %1425 = vmatprep.mubr.msk.f32.mxu0 %vm1727_vm0, %v1728_v1  ;;  %v633_v38 = vpop.permute.xlu1 %632 }
 0x8b2   :  { %1500 = vmatprep.subr.bf16.mxu0 %v1726_v0 }
 0x8b5   :  { %1502 = vmatpush3.bf16.msra.mxu0 %v1839_v13 }
 0x8b6   :  { %1509 = vmatprep.subr.bf16.mxu0 %v1726_v0 }
 0x983   :  { %v615_v28 = vpop.f32.mrb[4].mxu0 }
 0x984   :  { %v619_v29 = vadd.f32 %v615_v28, %v541_v27  ;;  %v1405_v30 = vpop.f32.mrb[5].mxu0 }
 0x986   :  { %1558 = vtanh.f32 %v619_v29  ;;  %v1285_v32 = vmul.f32 -1.442695, %v619_v29 }
 0x988   :  { %1560 = vpow2.f32 %v1285_v32 }
 0x990   :  { %v1559_v31 = vpop.eup %1558 }
 0x991   :  { %637 = vrot.lane.b32.xlu0 %v1559_v31, %s1729_s8  ;;  %v913_v31 = vld [vmem:[#allocation2 + $0x6] sm:$0x1] }
 0x992   :  { %v1561_v33 = vpop.eup %1560 }
 0x993   :  { %v623_v34 = vadd.f32 1.0, %v1561_v33 }
 0x995   :  { %1562 = vrcp.f32 %v623_v34 }
 0x99f   :  { %v1563_v35 = vpop.eup %1562 }
 0x9a0   :  { %v635_v39 = vmul.f32 %v1563_v35, %v633_v38 }
 0xa03   :  { %v638_v36 = vpop.permute.xlu0 %637 }
 0xa04   :  { %v640_v37 = vmul.f32 %v1563_v35, %v638_v36 }
 0xa06   :  { %642 = vrot.lane.b32.xlu0 %v640_v37, %s1730_s1 }
 0xa78   :  { %v643_v40 = vpop.permute.xlu0 %642 }
 0xa79   :  { %v645_v41 = vadd.f32 %v643_v40, %v635_v39 }
 0xa7b   :  { %1564 = vtanh.f32 %v645_v41 }
 0xa85   :  { %v1565_v42 = vpop.eup %1564 }
 0xa86   :  { %648 = vrot.lane.b32.xlu1 %v1565_v42, %s1729_s8 }
 0xa8a   :  { %653 = vrot.lane.b32.xlu1 %v645_v41, %s1731_s3 }
 0xaf8   :  { %v649_v43 = vpop.permute.xlu1 %648 }
 0xaf9   :  { %v651_v44 = vmul.f32 %v1563_v35, %v649_v43 }
 0xafb   :  { %658 = vrot.lane.b32.xlu0 %v651_v44, %s1730_s1 }
 0xafc   :  { %v654_v45 = vpop.permute.xlu1 %653 }
 0xafd   :  { %656 = vst.msk [vmem:[#allocation5] sm:$0x1] %vm164_vm1, %v654_v45 }
 0xb04   :  { %v1289_v46 = vld [vmem:[#allocation5] ss:$0 sm:$0xff] }
 0xb05   :  { %756 = vrot.lane.b32.xlu1 %v1289_v46, %s1730_s1 }
 0xb6d   :  { %v659_v47 = vpop.permute.xlu0 %658 }
 0xb6e   :  { %661 = vst.msk [vmem:[#allocation4] sm:$0x1] %vm164_vm1, %v659_v47  ;;  %662 = vst.msk [vmem:[#allocation3 + $0x3] sm:$0x1] %vm164_vm1, %v659_v47 }
 0xb75   :  { %v663_v48 = vld [vmem:[#allocation4] sm:$0x1] }
 0xb76   :  { %1415 = vmatmul.mubr.msk.f32.vlgmr.msra.gmra.mrb[4].mxu1 %vm89_vm2, %v663_v48 }
 0xb77   :  { %1505 = vmatpush3.bf16.msra.mxu1 %v1835_v12  ;;  %1436 = vmatprep.mubr.msk.f32.mxu1 %vm1727_vm0, %v1728_v1  ;;  %v757_v60 = vpop.permute.xlu1 %756 }
 0xb78   :  { %1506 = vmatprep.subr.bf16.mxu1 %v1726_v0 }
 0xb7b   :  { %1508 = vmatpush3.bf16.msra.mxu1 %v1839_v13 }
 0xb7c   :  { %1515 = vmatprep.subr.bf16.mxu1 %v1726_v0 }
 0xc49   :  { %v739_v50 = vpop.f32.mrb[4].mxu1 }
 0xc4a   :  { %v743_v51 = vadd.f32 %v739_v50, %v665_v49  ;;  %v1416_v52 = vpop.f32.mrb[5].mxu1 }
 0xc4b   :  { %v1037_v52 = vld [vmem:[#allocation2 + $0x7] sm:$0x1] }
 0xc4c   :  { %1566 = vtanh.f32 %v743_v51  ;;  %v1288_v54 = vmul.f32 -1.442695, %v743_v51 }
 0xc4e   :  { %1568 = vpow2.f32 %v1288_v54 }
 0xc56   :  { %v1567_v53 = vpop.eup %1566 }
 0xc57   :  { %761 = vrot.lane.b32.xlu0 %v1567_v53, %s1729_s8 }
 0xc58   :  { %v1569_v55 = vpop.eup %1568 }
 0xc59   :  { %v747_v56 = vadd.f32 1.0, %v1569_v55 }
 0xc5b   :  { %1570 = vrcp.f32 %v747_v56 }
 0xc65   :  { %v1571_v57 = vpop.eup %1570 }
 0xc66   :  { %v759_v61 = vmul.f32 %v1571_v57, %v757_v60 }
 0xcc9   :  { %v762_v58 = vpop.permute.xlu0 %761 }
 0xcca   :  { %v764_v59 = vmul.f32 %v1571_v57, %v762_v58 }
 0xccc   :  { %766 = vrot.lane.b32.xlu0 %v764_v59, %s1730_s1 }
 0xd3e   :  { %v767_v62 = vpop.permute.xlu0 %766 }
 0xd3f   :  { %v769_v63 = vadd.f32 %v767_v62, %v759_v61 }
 0xd41   :  { %1572 = vtanh.f32 %v769_v63 }
 0xd4b   :  { %v1573_v2 = vpop.eup %1572 }
 0xd4c   :  { %772 = vrot.lane.b32.xlu1 %v1573_v2, %s1729_s8 }
 0xd50   :  { %777 = vrot.lane.b32.xlu1 %v769_v63, %s1731_s3 }
 0xdbe   :  { %v773_v3 = vpop.permute.xlu1 %772 }
 0xdbf   :  { %v775_v4 = vmul.f32 %v1571_v57, %v773_v3 }
 0xdc1   :  { %782 = vrot.lane.b32.xlu0 %v775_v4, %s1730_s1 }
 0xdc2   :  { %v778_v5 = vpop.permute.xlu1 %777 }
 0xdc3   :  { %780 = vst.msk [vmem:[#allocation5] sm:$0x1] %vm164_vm1, %v778_v5 }
 0xdca   :  { %v1292_v6 = vld [vmem:[#allocation5] ss:$0 sm:$0xff] }
 0xdcb   :  { %880 = vrot.lane.b32.xlu1 %v1292_v6, %s1730_s1  ;;  %v1160_v6 = vld [vmem:[#allocation12] sm:$0xff] }
 0xe33   :  { %v783_v7 = vpop.permute.xlu0 %782 }
 0xe34   :  { %785 = vst.msk [vmem:[#allocation4] sm:$0x1] %vm164_vm1, %v783_v7  ;;  %786 = vst.msk [vmem:[#allocation3 + $0x4] sm:$0x1] %vm164_vm1, %v783_v7  ;;  %v1161_v7 = vld [vmem:[#allocation12 + $0x8] sm:$0xff] }
 0xe3b   :  { %v787_v8 = vld [vmem:[#allocation4] sm:$0x1] }
 0xe3c   :  { %1426 = vmatmul.mubr.msk.f32.vlgmr.msra.gmra.mrb[6].mxu0 %vm89_vm2, %v787_v8  ;;  %v1162_v8 = vld [vmem:[#allocation12 + $0x10] sm:$0xff] }
 0xe3d   :  { %1511 = vmatpush3.bf16.msra.mxu0 %v1835_v12  ;;  %1447 = vmatprep.mubr.msk.f32.mxu0 %vm1727_vm0, %v1728_v1  ;;  %v881_v21 = vpop.permute.xlu1 %880 }
 0xe3e   :  { %1512 = vmatprep.subr.bf16.mxu0 %v1726_v0 }
 0xe41   :  { %1514 = vmatpush3.bf16.msra.mxu0 %v1839_v13 }
 0xf0f   :  { %v863_v10 = vpop.f32.mrb[6].mxu0 }
 0xf10   :  { %v867_v11 = vadd.f32 %v863_v10, %v789_v9  ;;  %v1427_v14 = vpop.f32.mrb[7].mxu0  ;;  %v1516_v9 = vpack.c.bf16 %v1161_v7, %v1160_v6  ;;  %v1163_v10 = vld [vmem:[#allocation12 + $0x18] sm:$0xff] }
 0xf12   :  { %1574 = vtanh.f32 %v867_v11  ;;  %v1291_v16 = vmul.f32 -1.442695, %v867_v11  ;;  %v1519_v11 = vpack.c.bf16 %v1163_v10, %v1162_v8 }
 0xf14   :  { %1576 = vpow2.f32 %v1291_v16 }
 0xf1c   :  { %v1575_v15 = vpop.eup %1574 }
 0xf1d   :  { %885 = vrot.lane.b32.xlu0 %v1575_v15, %s1729_s8 }
 0xf1e   :  { %v1577_v17 = vpop.eup %1576 }
 0xf1f   :  { %v871_v18 = vadd.f32 1.0, %v1577_v17 }
 0xf21   :  { %1578 = vrcp.f32 %v871_v18  ;;  %v1299_v18 = vld [vmem:[%s1994_s5] ss:$0 sm:$0xff]  ;;  %s1732_s5 = smov [#allocation14]  }
 0xf22   :  { %s1262_s24 = sshll.u32 %s1732_s5, 4  ;;  %s1263_s24 = int_to_ptr.vmem [resolvable:$true] %s1262_s24 }
 0xf23   :  { %s1690_s25 = scalar_lea.vmem %s1263_s24, 128  ;;  %p1695_p5 = scmp.lt.s32.totalorder %s1263_s24, %s1263_s24 }
 0xf24   :  { %p1691_p4 = scmp.ne.s32.totalorder %s1263_s24, %s1690_s25  ;;  %p1696_p6 = scmp.lt.s32.totalorder %s1690_s25, %s1690_s25 }
 0xf26   :  { %p1697_p7 = por %p1696_p6, %p1695_p5 }
 0xf28   :  { %p1698_p8 = pnand %p1697_p7, %p1691_p4 }
 0xf2b   :  { %v1579_v12 = vpop.eup %1578 }
 0xf2c   :  { %v883_v13 = vmul.f32 %v1579_v12, %v881_v21 }
 0xf8f   :  { %v886_v19 = vpop.permute.xlu0 %885 }
 0xf90   :  { %v888_v20 = vmul.f32 %v1579_v12, %v886_v19 }
 0xf92   :  { %890 = vrot.lane.b32.xlu0 %v888_v20, %s1730_s1 }
0x1004   :  { %v891_v22 = vpop.permute.xlu0 %890 }
0x1005   :  { %v893_v23 = vadd.f32 %v891_v22, %v883_v13 }
0x1007   :  { %1580 = vtanh.f32 %v893_v23 }
0x1011   :  { %v1581_v24 = vpop.eup %1580 }
0x1012   :  { %896 = vrot.lane.b32.xlu1 %v1581_v24, %s1729_s8 }
0x1016   :  { %901 = vrot.lane.b32.xlu1 %v893_v23, %s1731_s3 }
0x1084   :  { %v897_v25 = vpop.permute.xlu1 %896 }
0x1085   :  { %v899_v26 = vmul.f32 %v1579_v12, %v897_v25 }
0x1087   :  { %906 = vrot.lane.b32.xlu0 %v899_v26, %s1730_s1 }
0x1088   :  { %v902_v27 = vpop.permute.xlu1 %901 }
0x1089   :  { %904 = vst.msk [vmem:[#allocation5] sm:$0x1] %vm164_vm1, %v902_v27 }
0x1090   :  { %v1295_v28 = vld [vmem:[#allocation5] ss:$0 sm:$0xff] }
0x1091   :  { %1004 = vrot.lane.b32.xlu1 %v1295_v28, %s1730_s1 }
0x10f9   :  { %v907_v29 = vpop.permute.xlu0 %906 }
0x10fa   :  { %909 = vst.msk [vmem:[#allocation4] sm:$0x1] %vm164_vm1, %v907_v29  ;;  %910 = vst.msk [vmem:[#allocation3 + $0x5] sm:$0x1] %vm164_vm1, %v907_v29 }
0x1101   :  { %v911_v30 = vld [vmem:[#allocation4] sm:$0x1] }
0x1102   :  { %1437 = vmatmul.mubr.msk.f32.vlgmr.msra.gmra.mrb[6].mxu1 %vm89_vm2, %v911_v30 }
0x1103   :  { %1458 = vmatprep.mubr.msk.f32.mxu1 %vm1727_vm0, %v1728_v1  ;;  %v1005_v42 = vpop.permute.xlu1 %1004  ;;  %1517 = vmatpush3.bf16.msra.mxu1 %v1516_v9 }
0x1104   :  { %1518 = vmatprep.subr.bf16.mxu1 %v1726_v0 }
0x1107   :  { %1520 = vmatpush3.bf16.msra.mxu1 %v1519_v11 }
0x11d5   :  { %v987_v32 = vpop.f32.mrb[6].mxu1 }
0x11d6   :  { %v991_v33 = vadd.f32 %v987_v32, %v913_v31  ;;  %v1438_v34 = vpop.f32.mrb[7].mxu1 }
0x11d8   :  { %1582 = vtanh.f32 %v991_v33  ;;  %v1294_v36 = vmul.f32 -1.442695, %v991_v33 }
0x11da   :  { %1584 = vpow2.f32 %v1294_v36 }
0x11e2   :  { %v1583_v35 = vpop.eup %1582 }
0x11e3   :  { %1009 = vrot.lane.b32.xlu0 %v1583_v35, %s1729_s8 }
0x11e4   :  { %v1585_v37 = vpop.eup %1584 }
0x11e5   :  { %v995_v38 = vadd.f32 1.0, %v1585_v37 }
0x11e7   :  { %1586 = vrcp.f32 %v995_v38 }
0x11f1   :  { %v1587_v39 = vpop.eup %1586 }
0x11f2   :  { %v1007_v1 = vmul.f32 %v1587_v39, %v1005_v42 }
0x1255   :  { %v1010_v40 = vpop.permute.xlu0 %1009 }
0x1256   :  { %v1012_v41 = vmul.f32 %v1587_v39, %v1010_v40 }
0x1258   :  { %1014 = vrot.lane.b32.xlu0 %v1012_v41, %s1730_s1 }
0x12ca   :  { %v1015_v43 = vpop.permute.xlu0 %1014 }
0x12cb   :  { %v1017_v44 = vadd.f32 %v1015_v43, %v1007_v1 }
0x12cd   :  { %1588 = vtanh.f32 %v1017_v44 }
0x12d7   :  { %v1589_v45 = vpop.eup %1588 }
0x12d8   :  { %1020 = vrot.lane.b32.xlu1 %v1589_v45, %s1729_s8 }
0x12dc   :  { %1025 = vrot.lane.b32.xlu1 %v1017_v44, %s1731_s3 }
0x134a   :  { %v1021_v46 = vpop.permute.xlu1 %1020 }
0x134b   :  { %v1023_v47 = vmul.f32 %v1587_v39, %v1021_v46 }
0x134d   :  { %1030 = vrot.lane.b32.xlu0 %v1023_v47, %s1730_s1 }
0x134e   :  { %v1026_v48 = vpop.permute.xlu1 %1025 }
0x134f   :  { %1028 = vst.msk [vmem:[#allocation5] sm:$0x1] %vm164_vm1, %v1026_v48 }
0x1356   :  { %v1298_v49 = vld [vmem:[#allocation5] ss:$0 sm:$0xff] }
0x1357   :  { %1128 = vrot.lane.b32.xlu1 %v1298_v49, %s1730_s1 }
0x13bf   :  { %v1031_v50 = vpop.permute.xlu0 %1030 }
0x13c0   :  { %1033 = vst.msk [vmem:[#allocation4] sm:$0x1] %vm164_vm1, %v1031_v50  ;;  %1034 = vst.msk [vmem:[#allocation3 + $0x6] sm:$0x1] %vm164_vm1, %v1031_v50 }
0x13c7   :  { %v1035_v51 = vld [vmem:[#allocation4] sm:$0x1] }
0x13c8   :  { %1448 = vmatmul.mubr.msk.f32.vlgmr.msra.gmra.mrb[8].mxu0 %vm89_vm2, %v1035_v51 }
0x13c9   :  { %v1129_v63 = vpop.permute.xlu1 %1128 }
0x149b   :  { %v1111_v53 = vpop.f32.mrb[8].mxu0 }
0x149c   :  { %v1115_v54 = vadd.f32 %v1111_v53, %v1037_v52  ;;  %v1449_v55 = vpop.f32.mrb[9].mxu0 }
0x149e   :  { %1590 = vtanh.f32 %v1115_v54  ;;  %v1297_v57 = vmul.f32 -1.442695, %v1115_v54 }
0x14a0   :  { %1592 = vpow2.f32 %v1297_v57 }
0x14a8   :  { %v1591_v56 = vpop.eup %1590 }
0x14a9   :  { %1133 = vrot.lane.b32.xlu0 %v1591_v56, %s1729_s8 }
0x14aa   :  { %v1593_v58 = vpop.eup %1592 }
0x14ab   :  { %v1119_v59 = vadd.f32 1.0, %v1593_v58 }
0x14ad   :  { %1594 = vrcp.f32 %v1119_v59 }
0x14b7   :  { %v1595_v60 = vpop.eup %1594 }
0x14b8   :  { %v1131_v2 = vmul.f32 %v1595_v60, %v1129_v63 }
0x151b   :  { %v1134_v61 = vpop.permute.xlu0 %1133 }
0x151c   :  { %v1136_v62 = vmul.f32 %v1595_v60, %v1134_v61 }
0x151e   :  { %1138 = vrot.lane.b32.xlu0 %v1136_v62, %s1730_s1 }
0x1590   :  { %v1139_v3 = vpop.permute.xlu0 %1138 }
0x1591   :  { %v1141_v4 = vadd.f32 %v1139_v3, %v1131_v2 }
0x1593   :  { %1596 = vtanh.f32 %v1141_v4 }
0x159d   :  { %v1597_v5 = vpop.eup %1596 }
0x159e   :  { %1144 = vrot.lane.b32.xlu1 %v1597_v5, %s1729_s8 }
0x1610   :  { %v1145_v14 = vpop.permute.xlu1 %1144 }
0x1611   :  { %v1147_v15 = vmul.f32 %v1595_v60, %v1145_v14 }
0x1613   :  { %1154 = vrot.lane.b32.xlu0 %v1147_v15, %s1730_s1 }
0x1685   :  { %v1155_v16 = vpop.permute.xlu0 %1154 }
0x1686   :  { %1157 = vst.msk [vmem:[#allocation4] sm:$0x1] %vm164_vm1, %v1155_v16  ;;  %1158 = vst.msk [vmem:[#allocation3 + $0x7] sm:$0x1] %vm164_vm1, %v1155_v16 }
0x168d   :  { %v1159_v17 = vld [vmem:[#allocation3] sm:$0xff] }
0x168e   :  { %1459 = vmatmul.mubr.msk.f32.vlgmr.msra.gmra.mrb[8].mxu1 %vm89_vm2, %v1159_v17 }
0x1761   :  { %v1240_v12 = vpop.f32.mrb[8].mxu1 }
0x1762   :  { %v1241_v19 = vadd.f32 %v1299_v18, %v1240_v12  ;;  %v1460_v0 = vpop.f32.mrb[9].mxu1 }
0x1764   :  { %1244 = vmax.xlane.f32.xlu1 %v1241_v19 }
0x17f1   :  { %v1245_v20 = vpop.xlane.xlu1 %1244 }
0x17f2   :  { %v1246_v21 = vsub.f32 %v1241_v19, %v1245_v20 }
0x17f4   :  { %v1247_v13 = vmul.f32 1.442695, %v1246_v21 }
0x17f6   :  { %1598 = vpow2.f32 %v1247_v13 }
0x1800   :  { %v1599_v22 = vpop.eup %1598 }
0x1801   :  { %1249 = vadd.xlane.f32.xlu0 %v1599_v22 }
0x1817   :  { %1149 = vrot.lane.b32.xlu0 %v1141_v4, %s1731_s3 }
0x188e   :  { %v1250_v23 = vpop.xlane.xlu0 %1249 }
0x188f   :  { %1600 = vlog2.f32 %v1250_v23 }
0x1892   :  { %v1150_v24 = vpop.permute.xlu0 %1149 }
0x1893   :  { %1152 = vst.msk [vmem:[#allocation5] sm:$0x1] %vm164_vm1, %v1150_v24 }
0x1899   :  { %v1601_v25 = vpop.eup %1600 }
0x189a   :  { %v1252_v26 = vmul.f32 0.6931472, %v1601_v25 }
0x189c   :  { %v1253_v27 = vadd.f32 %v1252_v26, %v1245_v20 }
0x189e   :  { %v1254_v28 = vsub.f32 %v1241_v19, %v1253_v27 }
0x18a0   :  { %1255 = vst [vmem:[#allocation14] sm:$0xff] %v1254_v28 }
0x18a1   :  { %1701 = shalt.err (!%p1698_p8)
}
0x18a2   :  { %s1702_s28 = scalar_lea.hbm %s1995_s6, 128 }
0x18a3   :  { %p1703_p9 = scmp.ne.s32.totalorder %s1995_s6, %s1702_s28  ;;  %p1706_p10 = scmp.lt.u32.totalorder %s1702_s28, %s1995_s6 }
0x18a5   :  { %p1708_p11 = pnand %p1706_p10, %p1703_p9 }
0x18a7   :  { %1711 = shalt.err (!%p1708_p11)
}
0x18a8   :  { %1265 = dma.vmem_to_hbm [thread:$0]  %s1263_s24, 128, %s1995_s6, [#allocation8]  }
0x18a9   :  { %1718 = dma.done.wait [#allocation8], 128  }
0x18aa   :  { %1719 = vsyncadd [#allocation8], 4294967168 }
0x18ab   :  { %1269 = vsyncpa [#allocation7], 1 }
0x18ac   :  { %1270 = vsyncpa [#allocation10], 1 }
0x18ad   :  { %1271 = vsyncpa [#allocation13], 1 }
0x18ae   :  { %1272 = vsyncpa [#allocation8], 1 }

</bundles_post_ra>
